<compile_context>
chip_gen: v7x
topology: tpu7x:2x2x1
jax: 0.10.0
libtpu: 0.0.40
codegen_flags: <defaults>
</compile_context>

<pallas_src>
import functools

import jax
import jax.numpy as jnp
from jax.experimental import pallas as pl
from jax.experimental.pallas import tpu as pltpu


def _round_up(x, m):
    return (x + m - 1) // m * m


def _fused_kernel(ab_ref, p1_ref, w2_ref, b2_ref, out_ref,
                  q_ref, sums_ref, pq_ref, *, n_atoms):
    phase = pl.program_id(0)
    i = pl.program_id(1)
    m_pad = sums_ref.shape[0]
    tile_n = ab_ref.shape[1]

    @pl.when(phase == 0)
    def _accumulate():
        @pl.when(i == 0)
        def _init():
            sums_ref[...] = jnp.zeros_like(sums_ref)

        # Linear(hidden -> 1) fused with a constant "ones" column on the MXU:
        #   q2[:, 0] = p1 @ w + b  (raw charge),   q2[:, 1] = 1  (atom count).
        q2 = jnp.dot(p1_ref[...], w2_ref[...],
                     preferred_element_type=jnp.float32) + b2_ref[...]    # [tile, 2]

        # Ragged last tile: rows past n_atoms contain undefined HBM data (could
        # be NaN/Inf); select-zero them before they can reach the accumulator.
        row = jax.lax.broadcasted_iota(jnp.int32, (tile_n, 1), 0)
        valid = (i * tile_n + row) < n_atoms                              # [tile, 1]
        q2 = jnp.where(valid, q2, 0.0)

        # Transposed one-hot molecule membership (atoms on lanes): [M_pad, tile].
        ab = ab_ref[...]                                                  # [1, tile]
        mol = jax.lax.broadcasted_iota(jnp.int32, (m_pad, tile_n), 0)
        onehot_t = jnp.where(mol == ab, 1.0, 0.0)                         # [M_pad, tile]

        # Segment-sum of [q | 1] per molecule, one MXU matmul for both columns.
        sums_ref[...] += jnp.dot(onehot_t, q2,
                                 preferred_element_type=jnp.float32)      # [M_pad, 2]

        # Stash the raw per-atom charge lane-dense in resident VMEM for phase 1.
        q_ref[pl.ds(i, 1), :] = jnp.transpose(q2[:, 0:1])                 # [1, tile]

    @pl.when(phase == 1)
    def _correct():
        @pl.when(i == 0)
        def _mean_charge():
            # Hoisted: computed once per call, not per tile.
            sums = sums_ref[...]
            q_batch = sums[:, 0:1]
            natoms = sums[:, 1:2]
            # Guard empty molecules so 0/0 never reaches the gather matmul.
            p_charge = jnp.where(natoms > 0.5, q_batch / natoms, 0.0)      # [M_pad, 1]
            pq_ref[...] = jnp.transpose(p_charge)                          # [1, M_pad]

        ab = ab_ref[...]                                                   # [1, tile]
        mol = jax.lax.broadcasted_iota(jnp.int32, (m_pad, tile_n), 0)
        onehot_t = jnp.where(mol == ab, 1.0, 0.0)                          # [M_pad, tile]
        corr = jnp.dot(pq_ref[...], onehot_t,
                       preferred_element_type=jnp.float32)                 # [1, tile]
        out_ref[...] = (q_ref[pl.ds(i, 1), :] - corr).astype(out_ref.dtype)


def system_charge_neutralize(atom_batch, p1, weight, bias, num_mol, tile_n=None):
    """atom_batch: [N] int, p1: [N, H] (native dtype), weight: [H, 1], bias: [1] -> [N, 1]."""
    n_atoms, hidden = p1.shape
    m_pad = _round_up(max(int(num_mol), 1), 8)
    itemsize = jnp.dtype(p1.dtype).itemsize

    if tile_n is None:
        # Target several MiB of live VMEM per grid step (double-buffered p1 tile
        # plus the [M_pad, tile] one-hot temporaries) so per-step DMA swamps the
        # ~0.35 us fixed overhead while staying well inside v7x's 64 MiB VMEM
        # (v5e/v6e have 128 MiB and fit trivially).
        budget_bytes = 16 * 1024 * 1024
        per_atom = 2 * hidden * itemsize + 3 * m_pad * 4 + 16
        tile_n = budget_bytes // per_atom
    tile_n = max(128, min(32768, _round_up(int(tile_n), 128)))
    tile_n = min(tile_n, _round_up(n_atoms, 128))
    nb = pl.cdiv(n_atoms, tile_n)
    last_block = nb - 1

    f32 = jnp.float32
    # No pad / dtype-cast copies of the big p1 array: it is consumed in its
    # native dtype; the ragged last tile is masked inside the kernel.
    ab_row = atom_batch.astype(jnp.int32).reshape(1, n_atoms)
    w2 = jnp.concatenate(
        [jnp.asarray(weight, p1.dtype).reshape(hidden, 1),
         jnp.zeros((hidden, 1), p1.dtype)], axis=1)                        # [H, 2]
    b2 = jnp.concatenate(
        [jnp.asarray(bias, f32).reshape(1), jnp.ones((1,), f32)]).reshape(1, 2)

    # VMEM budget: double-buffered tiles + resident scratch + matmul temps.
    vmem_est = (2 * tile_n * hidden * itemsize            # p1 in-tiles
                + 2 * tile_n * 4 * 2                      # atom_batch + out tiles
                + _round_up(nb, 8) * tile_n * 4           # q scratch
                + 3 * m_pad * tile_n * 4                  # one-hot / iota temps
                + 2 * _round_up(m_pad, 8) * 128 * 4)      # sums / p_charge scratch
    vmem_limit = int(min(48 * 1024 * 1024, max(32 * 1024 * 1024, 2 * vmem_est)))

    out_row = pl.pallas_call(
        functools.partial(_fused_kernel, n_atoms=n_atoms),
        grid=(2, nb),   # phase 0: accumulate, phase 1: apply correction
        in_specs=[
            pl.BlockSpec((1, tile_n), lambda ph, i: (0, i)),               # atom_batch
            # p1 is only read during phase 0; phase 1 pins the block index to the
            # last phase-0 block so no extra p1 DMA is issued.
            pl.BlockSpec((tile_n, hidden),
                         lambda ph, i: ((1 - ph) * i + ph * last_block, 0)),
            pl.BlockSpec((hidden, 2), lambda ph, i: (0, 0)),               # [w | 0]
            pl.BlockSpec((1, 2), lambda ph, i: (0, 0)),                    # [b , 1]
        ],
        # The output block index is frozen at 0 during phase 0 so no unwritten
        # tile is ever flushed; phase 1 walks and fully writes every tile.
        out_specs=pl.BlockSpec((1, tile_n), lambda ph, i: (0, i * ph)),
        out_shape=jax.ShapeDtypeStruct((1, n_atoms), p1.dtype),
        scratch_shapes=[
            pltpu.VMEM((nb, tile_n), f32),     # per-atom raw charge, lane-dense
            pltpu.VMEM((m_pad, 2), f32),       # [sum(q) | natoms] accumulator
            pltpu.VMEM((1, m_pad), f32),       # mean charge per molecule
        ],
        compiler_params=pltpu.CompilerParams(
            dimension_semantics=("arbitrary", "arbitrary"),
            vmem_limit_bytes=vmem_limit),
    )(ab_row, p1, w2, b2)

    return out_row.reshape(n_atoms, 1)


def _reference(atom_batch, p1, weight, bias, num_mol):
    q = (p1 @ weight.reshape(-1, 1) + bias.reshape(1, 1))[:, 0]
    q_batch = jax.ops.segment_sum(q, atom_batch, num_segments=num_mol)
    natoms = jax.ops.segment_sum(jnp.ones_like(q), atom_batch, num_segments=num_mol)
    p_charge = q_batch / natoms
    charge_corr = p_charge[atom_batch]
    return (q - charge_corr).reshape(-1, 1)


if __name__ == "__main__":
    key = jax.random.PRNGKey(0)
    k_p1, k_w, k_b = jax.random.split(key, 3)

    # Ragged atom count (not a multiple of 128) exercises the in-kernel validity
    # mask; molecule 2 is intentionally empty to exercise the 0/0 guard.
    n_atoms, hidden, num_mol = 371, 32, 6
    sizes = jnp.array([50, 90, 0, 113, 64, 54], dtype=jnp.int32)
    atom_batch = jnp.repeat(jnp.arange(num_mol, dtype=jnp.int32), sizes,
                            total_repeat_length=n_atoms)

    p1 = jax.random.normal(k_p1, (n_atoms, hidden), dtype=jnp.float32)
    weight = jax.random.normal(k_w, (hidden, 1), dtype=jnp.float32) * 0.1
    bias = jax.random.normal(k_b, (1,), dtype=jnp.float32) * 0.1

    out = system_charge_neutralize(atom_batch, p1, weight, bias, num_mol,
                                   tile_n=128)   # 3 atom tiles + ragged last tile
    out = jax.block_until_ready(out)

    ref = _reference(atom_batch, p1, weight, bias, num_mol)
    assert out.shape == (n_atoms, 1)
    assert bool(jnp.all(jnp.isfinite(out)))
    assert jnp.allclose(out, ref, atol=1e-5, rtol=1e-5), float(jnp.max(jnp.abs(out - ref)))
    print("KERNEL_OK")
</pallas_src>

<mosaic_0001>
module attributes {stable_mosaic.version = 11 : i64} {
  func.func @_fused_kernel(%arg0: i32, %arg1: i32, %arg2: memref<1x128xi32, #tpu.memory_space<vmem>>, %arg3: memref<128x32xf32, #tpu.memory_space<vmem>>, %arg4: memref<32x2xf32, #tpu.memory_space<vmem>>, %arg5: memref<1x2xf32, #tpu.memory_space<vmem>>, %arg6: memref<1x128xf32, #tpu.memory_space<vmem>>, %arg7: memref<3x128xf32, #tpu.memory_space<vmem>>, %arg8: memref<8x2xf32, #tpu.memory_space<vmem>>, %arg9: memref<1x8xf32, #tpu.memory_space<vmem>>) attributes {dimension_semantics = [#tpu.dimension_semantics<arbitrary>, #tpu.dimension_semantics<arbitrary>], iteration_bounds = array<i64: 2, 3>, scalar_prefetch = 0 : i64, scratch_operands = 3 : i64, tpu.core_type = #tpu.core_type<tc>, window_params = [{transform_indices = @transform_0, window_bounds = array<i64: 1, 128>}, {transform_indices = @transform_1, window_bounds = array<i64: 128, 32>}, {pipeline_mode = #tpu.pipeline_mode<synchronous>, transform_indices = @transform_2, window_bounds = array<i64: 32, 2>}, {pipeline_mode = #tpu.pipeline_mode<synchronous>, transform_indices = @transform_3, window_bounds = array<i64: 1, 2>}, {transform_indices = @transform_4, window_bounds = array<i64: 1, 128>}]} {
    %c0_i32 = arith.constant 0 : i32
    %0 = arith.cmpi eq, %arg0, %c0_i32 : i32
    %1 = arith.extui %0 : i1 to i32
    %c0_i32_0 = arith.constant 0 : i32
    %2 = arith.cmpi ne, %1, %c0_i32_0 : i32
    scf.if %2 {
      %c0_i32_2 = arith.constant 0 : i32
      %6 = arith.cmpi eq, %arg1, %c0_i32_2 : i32
      %7 = arith.extui %6 : i1 to i32
      %c0_i32_3 = arith.constant 0 : i32
      %8 = arith.cmpi ne, %7, %c0_i32_3 : i32
      scf.if %8 {
        %cst_20 = arith.constant 0.000000e+00 : f32
        %40 = vector.broadcast %cst_20 : f32 to vector<8x2xf32>
        %c0_21 = arith.constant 0 : index
        %c0_22 = arith.constant 0 : index
        %41 = vector.load %arg8[%c0_21, %c0_22] : memref<8x2xf32, #tpu.memory_space<vmem>>, vector<8x2xf32>
        tpu.vector_store %arg8[%c0_21, %c0_22], %40 {strides = array<i32>} : memref<8x2xf32, #tpu.memory_space<vmem>>, vector<8x2xf32>,
      } else {
      }
      %c0 = arith.constant 0 : index
      %c0_4 = arith.constant 0 : index
      %9 = vector.load %arg3[%c0, %c0_4] : memref<128x32xf32, #tpu.memory_space<vmem>>, vector<128x32xf32>
      %c0_5 = arith.constant 0 : index
      %c0_6 = arith.constant 0 : index
      %10 = vector.load %arg4[%c0_5, %c0_6] : memref<32x2xf32, #tpu.memory_space<vmem>>, vector<32x2xf32>
      %cst = arith.constant dense<0.000000e+00> : vector<128x2xf32>
      %11 = tpu.matmul %9, %10, %cst {dimension_numbers = #tpu.dot_dimension_numbers<[1], [0], [0], [1], [0, 0, 1, 1], [], []>} : vector<128x32xf32>, vector<32x2xf32>, vector<128x2xf32> -> vector<128x2xf32>
      %c0_7 = arith.constant 0 : index
      %c0_8 = arith.constant 0 : index
      %12 = vector.load %arg5[%c0_7, %c0_8] : memref<1x2xf32, #tpu.memory_space<vmem>>, vector<1x2xf32>
      %13 = vector.broadcast %12 : vector<1x2xf32> to vector<128x2xf32>
      %14 = arith.addf %11, %13 : vector<128x2xf32>
      %15 = tpu.iota {dimensions = array<i32: 0>} : vector<128x1xi32>
      %c128_i32 = arith.constant 128 : i32
      %16 = arith.muli %arg1, %c128_i32 : i32
      %17 = vector.broadcast %16 : i32 to vector<128x1xi32>
      %18 = arith.addi %17, %15 : vector<128x1xi32>
      %c371_i32 = arith.constant 371 : i32
      %19 = vector.broadcast %c371_i32 : i32 to vector<128x1xi32>
      %20 = arith.cmpi slt, %18, %19 : vector<128x1xi32>
      %cst_9 = arith.constant 0.000000e+00 : f32
      %21 = vector.shape_cast %20 : vector<128x1xi1> to vector<128x1xi1>
      %22 = vector.broadcast %21 : vector<128x1xi1> to vector<128x2xi1>
      %23 = vector.broadcast %cst_9 : f32 to vector<128x2xf32>
      %24 = arith.select %22, %14, %23 : vector<128x2xi1>, vector<128x2xf32>
      %c0_10 = arith.constant 0 : index
      %c0_11 = arith.constant 0 : index
      %25 = vector.load %arg2[%c0_10, %c0_11] : memref<1x128xi32, #tpu.memory_space<vmem>>, vector<1x128xi32>
      %26 = tpu.iota {dimensions = array<i32: 0>} : vector<8x128xi32>
      %27 = vector.broadcast %25 : vector<1x128xi32> to vector<8x128xi32>
      %28 = arith.cmpi eq, %26, %27 : vector<8x128xi32>
      %cst_12 = arith.constant 1.000000e+00 : f32
      %cst_13 = arith.constant 0.000000e+00 : f32
      %29 = vector.broadcast %cst_12 : f32 to vector<8x128xf32>
      %30 = vector.broadcast %cst_13 : f32 to vector<8x128xf32>
      %31 = arith.select %28, %29, %30 : vector<8x128xi1>, vector<8x128xf32>
      %c0_14 = arith.constant 0 : index
      %c0_15 = arith.constant 0 : index
      %32 = vector.load %arg8[%c0_14, %c0_15] : memref<8x2xf32, #tpu.memory_space<vmem>>, vector<8x2xf32>
      %cst_16 = arith.constant dense<0.000000e+00> : vector<8x2xf32>
      %33 = tpu.matmul %31, %24, %cst_16 {dimension_numbers = #tpu.dot_dimension_numbers<[1], [0], [0], [1], [0, 0, 1, 1], [], []>} : vector<8x128xf32>, vector<128x2xf32>, vector<8x2xf32> -> vector<8x2xf32>
      %34 = arith.addf %32, %33 : vector<8x2xf32>
      %c0_17 = arith.constant 0 : index
      %c0_18 = arith.constant 0 : index
      %35 = vector.load %arg8[%c0_17, %c0_18] : memref<8x2xf32, #tpu.memory_space<vmem>>, vector<8x2xf32>
      tpu.vector_store %arg8[%c0_17, %c0_18], %34 {strides = array<i32>} : memref<8x2xf32, #tpu.memory_space<vmem>>, vector<8x2xf32>,
      %36 = vector.extract_strided_slice %24 {offsets = [0, 0], sizes = [128, 1], strides = [1, 1]} : vector<128x2xf32> to vector<128x1xf32>
      %37 = tpu.transpose %36, [1, 0] : vector<128x1xf32> -> vector<1x128xf32>
      %38 = arith.index_cast %arg1 : i32 to index
      %c0_19 = arith.constant 0 : index
      %39 = vector.load %arg7[%38, %c0_19] : memref<3x128xf32, #tpu.memory_space<vmem>>, vector<1x128xf32>
      tpu.vector_store %arg7[%38, %c0_19], %37 {strides = array<i32>} : memref<3x128xf32, #tpu.memory_space<vmem>>, vector<1x128xf32>,
    } else {
    }
    %c1_i32 = arith.constant 1 : i32
    %3 = arith.cmpi eq, %arg0, %c1_i32 : i32
    %4 = arith.extui %3 : i1 to i32
    %c0_i32_1 = arith.constant 0 : i32
    %5 = arith.cmpi ne, %4, %c0_i32_1 : i32
    scf.if %5 {
      %c0_i32_2 = arith.constant 0 : i32
      %6 = arith.cmpi eq, %arg1, %c0_i32_2 : i32
      %7 = arith.extui %6 : i1 to i32
      %c0_i32_3 = arith.constant 0 : i32
      %8 = arith.cmpi ne, %7, %c0_i32_3 : i32
      scf.if %8 {
        %c0_12 = arith.constant 0 : index
        %c0_13 = arith.constant 0 : index
        %22 = vector.load %arg8[%c0_12, %c0_13] : memref<8x2xf32, #tpu.memory_space<vmem>>, vector<8x2xf32>
        %23 = vector.extract_strided_slice %22 {offsets = [0, 0], sizes = [8, 1], strides = [1, 1]} : vector<8x2xf32> to vector<8x1xf32>
        %24 = vector.extract_strided_slice %22 {offsets = [0, 1], sizes = [8, 1], strides = [1, 1]} : vector<8x2xf32> to vector<8x1xf32>
        %cst_14 = arith.constant 5.000000e-01 : f32
        %25 = vector.broadcast %cst_14 : f32 to vector<8x1xf32>
        %26 = arith.cmpf ogt, %24, %25 : vector<8x1xf32>
        %27 = arith.divf %23, %24 : vector<8x1xf32>
        %cst_15 = arith.constant 0.000000e+00 : f32
        %28 = vector.broadcast %cst_15 : f32 to vector<8x1xf32>
        %29 = arith.select %26, %27, %28 : vector<8x1xi1>, vector<8x1xf32>
        %30 = tpu.transpose %29, [1, 0] : vector<8x1xf32> -> vector<1x8xf32>
        %c0_16 = arith.constant 0 : index
        %c0_17 = arith.constant 0 : index
        %31 = vector.load %arg9[%c0_16, %c0_17] : memref<1x8xf32, #tpu.memory_space<vmem>>, vector<1x8xf32>
        tpu.vector_store %arg9[%c0_16, %c0_17], %30 {strides = array<i32>} : memref<1x8xf32, #tpu.memory_space<vmem>>, vector<1x8xf32>,
      } else {
      }
      %c0 = arith.constant 0 : index
      %c0_4 = arith.constant 0 : index
      %9 = vector.load %arg2[%c0, %c0_4] : memref<1x128xi32, #tpu.memory_space<vmem>>, vector<1x128xi32>
      %10 = tpu.iota {dimensions = array<i32: 0>} : vector<8x128xi32>
      %11 = vector.broadcast %9 : vector<1x128xi32> to vector<8x128xi32>
      %12 = arith.cmpi eq, %10, %11 : vector<8x128xi32>
      %cst = arith.constant 1.000000e+00 : f32
      %cst_5 = arith.constant 0.000000e+00 : f32
      %13 = vector.broadcast %cst : f32 to vector<8x128xf32>
      %14 = vector.broadcast %cst_5 : f32 to vector<8x128xf32>
      %15 = arith.select %12, %13, %14 : vector<8x128xi1>, vector<8x128xf32>
      %c0_6 = arith.constant 0 : index
      %c0_7 = arith.constant 0 : index
      %16 = vector.load %arg9[%c0_6, %c0_7] : memref<1x8xf32, #tpu.memory_space<vmem>>, vector<1x8xf32>
      %cst_8 = arith.constant dense<0.000000e+00> : vector<1x128xf32>
      %17 = tpu.matmul %16, %15, %cst_8 {dimension_numbers = #tpu.dot_dimension_numbers<[1], [0], [0], [1], [0, 0, 1, 1], [], []>} : vector<1x8xf32>, vector<8x128xf32>, vector<1x128xf32> -> vector<1x128xf32>
      %18 = arith.index_cast %arg1 : i32 to index
      %c0_9 = arith.constant 0 : index
      %19 = vector.load %arg7[%18, %c0_9] : memref<3x128xf32, #tpu.memory_space<vmem>>, vector<1x128xf32>
      %20 = arith.subf %19, %17 : vector<1x128xf32>
      %c0_10 = arith.constant 0 : index
      %c0_11 = arith.constant 0 : index
      %21 = vector.load %arg6[%c0_10, %c0_11] : memref<1x128xf32, #tpu.memory_space<vmem>>, vector<1x128xf32>
      tpu.vector_store %arg6[%c0_10, %c0_11], %20 {strides = array<i32>} : memref<1x128xf32, #tpu.memory_space<vmem>>, vector<1x128xf32>,
    } else {
    }
    return
  }
  func.func @transform_0(%arg0: i32, %arg1: i32) -> (i32, i32) {
    %c0_i32 = arith.constant 0 : i32
    %c0_i32_0 = arith.constant 0 : i32
    return %c0_i32, %arg1 : i32, i32
  }
  func.func @transform_1(%arg0: i32, %arg1: i32) -> (i32, i32) {
    %c1_i32 = arith.constant 1 : i32
    %0 = arith.subi %c1_i32, %arg0 : i32
    %1 = arith.muli %0, %arg1 : i32
    %c2_i32 = arith.constant 2 : i32
    %2 = arith.muli %arg0, %c2_i32 : i32
    %3 = arith.addi %1, %2 : i32
    %c0_i32 = arith.constant 0 : i32
    %c0_i32_0 = arith.constant 0 : i32
    return %3, %c0_i32 : i32, i32
  }
  func.func @transform_2(%arg0: i32, %arg1: i32) -> (i32, i32) {
    %c0_i32 = arith.constant 0 : i32
    %c0_i32_0 = arith.constant 0 : i32
    %c0_i32_1 = arith.constant 0 : i32
    return %c0_i32, %c0_i32_0 : i32, i32
  }
  func.func @transform_3(%arg0: i32, %arg1: i32) -> (i32, i32) {
    %c0_i32 = arith.constant 0 : i32
    %c0_i32_0 = arith.constant 0 : i32
    %c0_i32_1 = arith.constant 0 : i32
    return %c0_i32, %c0_i32_0 : i32, i32
  }
  func.func @transform_4(%arg0: i32, %arg1: i32) -> (i32, i32) {
    %0 = arith.muli %arg1, %arg0 : i32
    %c0_i32 = arith.constant 0 : i32
    %c0_i32_0 = arith.constant 0 : i32
    return %c0_i32, %0 : i32, i32
  }
}

</mosaic_0001>

<bundles_post_ra>
// kernel: tpu_custom_call.1
= control target key start
LH: loop header
LB: loop body
LE: loop exit
PB: predicated region body
PF: predicated region fallthrough
CT: control target
= control target key end

     0   :  { %9 = vsyncpa [#allocation6], 0  ;;  %s1714_s0 = inlined_call_operand.vmem [shape: s32[1,371], index: 0, kind: input, shape index: {}]   ;;  %s1715_s1 = inlined_call_operand.vmem [shape: f32[371,32], index: 1, kind: input, shape index: {}]   ;;  %s1716_s2 = inlined_call_operand.vmem [shape: f32[32,2], index: 2, kind: input, shape index: {}]   ;;  %s1717_s3 = inlined_call_operand.vmem [shape: f32[1,2], index: 3, kind: input, shape index: {}]   ;;  %s1718_s4 = inlined_call_operand.hbm [shape: f32[1,371], index: 4, kind: output, shape index: {}]  }
   0x1   :  { %11 = vsyncpa [#allocation6 + $0x1], 0  ;;  %s1380_s15 = smov 0   ;;  %s1382_s16 = smov 0  }
   0x2   :  { %s1384_s17 = smov 0   ;;  %s1386_s18 = smov 0  }
   0x3   :  { %s1388_s19 = smov 0   ;;  %s1390_s20 = smov 0  }
   0x4   :  { %s1392_s21 = smov 0   ;;  %s1394_s22 = smov 0  }
   0x5 LB: > { %s957_s23 = sadd.s32 4294967295, %s1342_s22   ;;  %s958_s24 = sadd.s32 4294967294, %s1342_s22   ;;  %s1342_s22 = sphi %s1394_s22, %s17_s22   ;;  %s1338_s21 = sphi %s1392_s21, %s1733_s21   ;;  %s1334_s20 = sphi %s1390_s20, %s1732_s20   ;;  %s1330_s19 = sphi %s1388_s19, %s1731_s19   ;;  %s1326_s18 = sphi %s1386_s18, %s1730_s18   ;;  %s1322_s17 = sphi %s1384_s17, %s1729_s17   ;;  %s1318_s16 = sphi %s1382_s16, %s1728_s16   ;;  %s1314_s15 = sphi %s1380_s15, %s1727_s15  }
   0x6   : > { %s26_s25 = sadd.s32 1, %s1334_s20  ;;  %s29_s26 = sadd.s32 1, %s1338_s21 }
   0x7   : > { %p27_p0 = scmp.ge.s32.totalorder %s26_s25, 3  ;;  %s135_s27 = smul.u32 %s1334_s20, %s1338_s21 }
   0x8   : > { %p150_p1 = scmp.ne.s32.totalorder %s1322_s17, %s1318_s16  ;;  %p151_p2 = scmp.eq.s32.totalorder %s957_s23, 5 }
   0x9   : > { %s1735_s25 = smov (%p27_p0, %s26_s25), 0  ;;  %s1737_s26 = smov (!%p27_p0, %s29_s26), %s1338_s21 }
   0xa   : > { %1721 = sst [smem:[#allocation8_spill]] %s1735_s25  ;;  %p156_p3 = scmp.ne.s32.totalorder %s1318_s16, %s1314_s15 }
   0xb   : > { %p31_p4 = scmp.ge.s32.totalorder %s1737_s26, 2  ;;  %p157_p5 = scmp.eq.s32.totalorder %s958_s24, 5 }
   0xc   : > { %p1433_p6 = por %p151_p2, %p150_p1  ;;  %p963_p7 = scmp.ge.s32.totalorder %s1342_s22, 1 }
   0xd   : > { %s1739_s26 = smov (%p31_p4, %s1737_s26), 0  ;;  %p1440_p8 = por %p157_p5, %p156_p3 }
   0xe   : > { %1723 = sst [smem:[#allocation9_spill]] %s1739_s26  ;;  %p212_p9 = scmp.lt.s32.totalorder %s1342_s22, 7 }
   0xf   : > { %s136_s30 = smul.u32 %s1739_s26, %s1735_s25  ;;  %s140_s6 = sadd.s32 1, %s1322_s17 }
  0x10   : > { %p213_p10 = pnand %p963_p7, %p212_p9 }
  0x11   : > { %s137_s5 = ssub.s32 %s135_s27, %s136_s30  ;;  %s246_s8 = sand.u32 (!%p213_p10), 1, %s1318_s16  }
  0x12   : > { %p138_p11 = scmp.eq.s32.totalorder %s137_s5, 0  ;;  %216 = sbr.rel (%p213_p10) target bundleno = 1260 (0x4ec), region = 36 }
  0x13   : > { %p248_p12 = scmp.lt.s32.totalorder (!%p213_p10), %s1326_s18, 2  ;;  %s251_s9 = ssub.s32 (!%p213_p10), 1, %s1330_s19 }
  0x14   : > { %s1449_s7 = scalar_select %p138_p11, %s1322_s17, %s140_s6  }
  0x15   : > { %s252_s11 = smul.u32 (!%p213_p10), %s1326_s18, %s251_s9  ;;  %s964_s12 = sshll.u32 (!%p213_p10), %s1330_s19, 1 }
  0x16   : > { %s1469_s25 = scalar_lea.vmem (!%p213_p10), [#allocation5], %s246_s8  ;;  %p967_p0 = scmp.ne.s32.totalorder (!%p213_p10), %s1330_s19, 0 }
  0x17   : > { %s254_s24 = sadd.s32 (!%p213_p10), %s964_s12, %s252_s11 }
  0x18   : > { %s965_s27 = sshll.u32 (!%p213_p10), %s254_s24, 4 }
  0x19   : > { %s249_s10 = scalar_select %p248_p12, %s1326_s18, 2 }
  0x1a   : > { %p260_p13 = scmp.lt.s32.totalorder %s965_s27, 46  ;;  %277 = sbr.rel (%p967_p0) target bundleno = 514 (0x202), region = 40 }
  0x1b   : > { %s1460_s23 = scalar_lea.vmem %s1714_s0, %s249_s10  ;;  %p968_p1 = scmp.ne.s32.totalorder (!%p967_p0), %s1326_s18, 0 }
  0x1c   : > { %s1741_s27 = smov (!%p260_p13, %s965_s27), 46 }
  0x1d   : > { %s966_s30 = sshll.u32 %s1741_s27, 3 }
  0x1e   : > { %s1465_s26 = scalar_lea.vmem %s1715_s1, %s966_s30 }
  0x21   : > { %281 = sbr.rel (%p968_p1) target bundleno = 40 (0x28), region = 44  ;;  %vm282_vm0 = vcmask (!%p968_p1), 15360   ;;  %v1344_v0 = vmov (!%p968_p1), 0.0  }
  0x22   : > { %283 = vst.msk [vmem:[#allocation3] sm:$0xff] (!%p968_p1), %vm282_vm0, %v1344_v0 }
  0x28 PF: > { %v300_v1 = vld [vmem:[%s1716_s2] sm:$0xff]  ;;  %v301_v2 = vld [vmem:[%s1716_s2 + $0x8] sm:$0xff]  ;;  %v302_v3 = vld [vmem:[%s1716_s2 + $0x10] sm:$0xff]  ;;  %vm311_vm1 = vcmask 261120   ;;  %v1345_v23 = vmov 0.0|0.0   ;;  %vm1346_vm2 = vmmov 0   ;;  %v505_v25 = vlaneseq }
  0x29   : > { %v1124_v4 = vpack.c.bf16 %v301_v2, %v300_v1  ;;  %v303_v5 = vld [vmem:[%s1716_s2 + $0x18] sm:$0xff]  ;;  %v284_v6 = vld [vmem:[%s1465_s26] sm:$0xff]  ;;  %v285_v8 = vld [vmem:[%s1465_s26 + $0x8] sm:$0xff]  ;;  %1132 = vmatprep.subr.bf16.mxu1 %v1345_v23  ;;  %v1347_v24 = vmov 0.0   ;;  %s986_s30 = sshll.u32 %s1326_s18, 7  ;;  %s717_s6 = scalar_lea.vmem [#allocation2], %s1326_s18 }
  0x2a   : > { %v1128_v7 = vpack.c.bf16 %v303_v5, %v302_v3  ;;  %1060 = vmatprep.mubr.msk.f32.mxu0 %vm311_vm1, %v284_v6  ;;  %v286_v9 = vld [vmem:[%s1465_s26 + $0x10] sm:$0xff]  ;;  %v287_v10 = vld [vmem:[%s1465_s26 + $0x18] sm:$0xff]  ;;  %v288_v11 = vld [vmem:[%s1465_s26 + $0x20] sm:$0xff]  ;;  %1116 = vmatprep.mubr.msk.f32.mxu1 %vm1346_vm2, %v1347_v24  ;;  %v1518_v26 = vshrl.u32 %v505_v25, 7  ;;  %v1521_v27 = vstv %s986_s30 }
  0x2b   : > { %1125 = vmatprep.subr.bf16.mxu0 %v1124_v4  ;;  %v289_v12 = vld [vmem:[%s1465_s26 + $0x28] sm:$0xff]  ;;  %v290_v13 = vld [vmem:[%s1465_s26 + $0x30] sm:$0xff]  ;;  %v291_v14 = vld [vmem:[%s1465_s26 + $0x38] sm:$0xff] }
  0x2c   : > { %1127 = vmatpush3.bf16.msra.mxu0 %v1124_v4  ;;  %v292_v15 = vld [vmem:[%s1465_s26 + $0x40] sm:$0xff]  ;;  %v293_v16 = vld [vmem:[%s1465_s26 + $0x48] sm:$0xff]  ;;  %v294_v17 = vld [vmem:[%s1465_s26 + $0x50] sm:$0xff]  ;;  %v507_v28 = vadd.s32 8, %v1518_v26  ;;  %v524_v29 = vadd.s32 %v1521_v27, %v1518_v26  ;;  %v508_v30 = vadd.s32 16, %v1518_v26  ;;  %v509_v33 = vadd.s32 24, %v1518_v26 }
  0x2d   : > { %1129 = vmatprep.subr.bf16.mxu0 %v1128_v7  ;;  %v295_v18 = vld [vmem:[%s1465_s26 + $0x58] sm:$0xff]  ;;  %v296_v19 = vld [vmem:[%s1465_s26 + $0x60] sm:$0xff]  ;;  %v297_v20 = vld [vmem:[%s1465_s26 + $0x68] sm:$0xff]  ;;  %v510_v34 = vadd.s32 32, %v1518_v26  ;;  %v511_v41 = vadd.s32 40, %v1518_v26  ;;  %v512_v46 = vadd.s32 48, %v1518_v26 }
  0x2e   : > { %v298_v21 = vld [vmem:[%s1465_s26 + $0x70] sm:$0xff]  ;;  %v299_v22 = vld [vmem:[%s1465_s26 + $0x78] sm:$0xff]  ;;  %v1530_v31 = vld [vmem:[%s1717_s3] ss:$0 sm:$0xff]  ;;  %v525_v32 = vadd.s32 %v1521_v27, %v507_v28  ;;  %vm540_vm3 = vcmp.lt.s32.totalorder %v524_v29, 371  ;;  %v526_v36 = vadd.s32 %v1521_v27, %v508_v30  ;;  %v527_v40 = vadd.s32 %v1521_v27, %v509_v33 }
  0x2f   : > { %v1542_v42 = vadd.s32 %v1521_v27, %v510_v34  ;;  %v1548_v50 = vadd.s32 %v1521_v27, %v511_v41  ;;  %v513_v51 = vadd.s32 56, %v1518_v26  ;;  %v1557_v55 = vadd.s32 %v1521_v27, %v512_v46 }
  0x30   : > { %1131 = vmatpush3.bf16.msra.mxu0 %v1128_v7  ;;  %vm541_vm4 = vcmp.lt.s32.totalorder %v525_v32, 371  ;;  %vm542_vm6 = vcmp.lt.s32.totalorder %v526_v36, 371  ;;  %vm543_vm7 = vcmp.lt.s32.totalorder %v527_v40, 371  ;;  %v514_v56 = vadd.s32 64, %v1518_v26 }
  0x31   : > { %vm1134_vm5 = vmpackc.low %vm541_vm4, %vm540_vm3  ;;  %vm544_vm9 = vcmp.lt.s32.totalorder %v1542_v42, 371  ;;  %vm545_vm10 = vcmp.lt.s32.totalorder %v1548_v50, 371  ;;  %v1564_v60 = vadd.s32 %v1521_v27, %v513_v51  ;;  %v515_v61 = vadd.s32 72, %v1518_v26 }
  0x32   : > { %vm1138_vm8 = vmpackc.low %vm543_vm7, %vm542_vm6  ;;  %v516_v62 = vadd.s32 80, %v1518_v26  ;;  %vm546_vm12 = vcmp.lt.s32.totalorder %v1557_v55, 371  ;;  %v1576_v2 = vadd.s32 %v1521_v27, %v514_v56  ;;  %v517_v7 = vadd.s32 88, %v1518_v26  ;;  %v611_v55 = vld [vmem:[#allocation3] sm:$0xff] }
  0x33   : > { %1061 = vmatmul.mubr.msk.f32.vlgmr.msra.gmra.mrb[0].mxu0 %vm311_vm1, %v285_v8  ;;  %vm1142_vm11 = vmpackc.low %vm545_vm10, %vm544_vm9  ;;  %vm547_vm13 = vcmp.lt.s32.totalorder %v1564_v60, 371  ;;  %v1584_v6 = vadd.s32 %v1521_v27, %v515_v61  ;;  %v521_v30 = vadd.s32 120, %v1518_v26 }
  0x34   : > { %1063 = vmatprep.mubr.msk.f32.mxu0 %vm311_vm1, %v286_v9  ;;  %vm1146_vm14 = vmpackc.low %vm547_vm13, %vm546_vm12  ;;  %v1593_v8 = vadd.s32 %v1521_v27, %v516_v62  ;;  %vm548_vm15 = vcmp.lt.s32.totalorder %v1576_v2, 371 }
  0x35   : > { %vm549_vm0 = vcmp.lt.s32.totalorder %v1584_v6, 371 }
  0x36   : > { %vm550_vm2 = vcmp.lt.s32.totalorder %v1593_v8, 371 }
  0x37   : > { %1064 = vmatmul.mubr.msk.f32.gmra.mrb[2].mxu0 %vm311_vm1, %v287_v10 }
  0x38   : > { %1066 = vmatprep.mubr.msk.f32.mxu0 %vm311_vm1, %v288_v11 }
  0x3b   : > { %1067 = vmatmul.mubr.msk.f32.gmra.mrb[4].mxu0 %vm311_vm1, %v289_v12  ;;  %v518_v12 = vadd.s32 96, %v1518_v26 }
  0x3c   : > { %1069 = vmatprep.mubr.msk.f32.mxu0 %vm311_vm1, %v290_v13 }
  0x3f   : > { %1070 = vmatmul.mubr.msk.f32.gmra.mrb[6].mxu0 %vm311_vm1, %v291_v14 }
  0x40   : > { %1072 = vmatprep.mubr.msk.f32.mxu0 %vm311_vm1, %v292_v15 }
  0x43   : > { %1073 = vmatmul.mubr.msk.f32.gmra.mrb[8].mxu0 %vm311_vm1, %v293_v16  ;;  %v535_v16 = vadd.s32 %v1521_v27, %v517_v7 }
  0x44   : > { %1075 = vmatprep.mubr.msk.f32.mxu0 %vm311_vm1, %v294_v17  ;;  %v519_v17 = vadd.s32 104, %v1518_v26 }
  0x46   : > { %v537_v29 = vadd.s32 %v1521_v27, %v519_v17 }
  0x47   : > { %1076 = vmatmul.mubr.msk.f32.gmra.mrb[10].mxu0 %vm311_vm1, %v295_v18 }
  0x48   : > { %1078 = vmatprep.mubr.msk.f32.mxu0 %vm311_vm1, %v296_v19 }
  0x4b   : > { %1079 = vmatmul.mubr.msk.f32.gmra.mrb[12].mxu0 %vm311_vm1, %v297_v20 }
  0x4c   : > { %1081 = vmatprep.mubr.msk.f32.mxu0 %vm311_vm1, %v298_v21  ;;  %v536_v21 = vadd.s32 %v1521_v27, %v518_v12 }
  0x4f   : > { %1082 = vmatmul.mubr.msk.f32.gmra.mrb[14].mxu0 %vm311_vm1, %v299_v22  ;;  %vm1150_vm1 = vmpackc.low %vm549_vm0, %vm548_vm15  ;;  %v520_v22 = vadd.s32 112, %v1518_v26 }
 0x106   : > { %v1062_v35 = vpop.f32.mrb[0].mxu0 }
 0x107   : > { %v432_v37 = vadd.f32 %v1062_v35, %v1530_v31  ;;  %v426_v38 = vpop.f32.mrb[1].mxu0  ;;  %v538_v35 = vadd.s32 %v1521_v27, %v520_v22 }
 0x108   : > { %v427_v39 = vadd.f32 %v1530_v31, %v426_v38 }
 0x109   : > { %v589_v54 = vsel %vm541_vm4, %v432_v37, 0.0 }
 0x10a   : > { %v1133_v43 = vpack.c.bf16 %v432_v37, %v427_v39  ;;  %v1065_v44 = vpop.f32.mrb[2].mxu0  ;;  %v588_v45 = vsel %vm540_vm3, %v427_v39, 0.0  ;;  %vm551_vm3 = vcmp.lt.s32.totalorder %v535_v16, 371  ;;  %v539_v39 = vadd.s32 %v1521_v27, %v521_v30  ;;  %v987_v27 = vld [vmem:[%s1460_s23] ss:$0 sm:$0xff] }
 0x10b   : > { %v442_v47 = vadd.f32 %v1065_v44, %v1530_v31  ;;  %v436_v48 = vpop.f32.mrb[3].mxu0  ;;  %685 = vxpose.xlu0.b32.start [1/16] (narrow) %v588_v45, 8  ;;  %vm1154_vm4 = vmpackc.low %vm551_vm3, %vm550_vm2 }
 0x10c   : > { %v437_v49 = vadd.f32 %v1530_v31, %v436_v48  ;;  %1135 = vmatpush3.bf16.msk.msra.mxu1 %vm1134_vm5, %v1133_v43  ;;  %vm552_vm5 = vcmp.lt.s32.totalorder %v536_v21, 371  ;;  %v1348_v48 = vmov 1.0  }
 0x10d   : > { %1136 = vmatprep.subr.bf16.mxu1 %v1345_v23  ;;  %v591_v11 = vsel %vm543_vm7, %v442_v47, 0.0 }
 0x10e   : > { %v1137_v52 = vpack.c.bf16 %v442_v47, %v437_v49  ;;  %v1068_v53 = vpop.f32.mrb[4].mxu0  ;;  %v590_v1 = vsel %vm542_vm6, %v437_v49, 0.0  ;;  %vm553_vm6 = vcmp.lt.s32.totalorder %v537_v29, 371 }
 0x10f   : > { %v452_v57 = vadd.f32 %v1068_v53, %v1530_v31  ;;  %v446_v58 = vpop.f32.mrb[5].mxu0  ;;  %686 = vxpose.xlu0.b32.cont [2/16] (narrow) %v589_v54, 8  ;;  %vm1158_vm7 = vmpackc.low %vm553_vm6, %vm552_vm5 }
 0x110   : > { %v447_v59 = vadd.f32 %v1530_v31, %v446_v58  ;;  %1139 = vmatpush3.bf16.msk.msra.mxu1 %vm1138_vm8, %v1137_v52  ;;  %vm554_vm8 = vcmp.lt.s32.totalorder %v538_v35, 371 }
 0x111   : > { %1140 = vmatprep.subr.bf16.mxu1 %v1345_v23  ;;  %v593_v34 = vsel %vm545_vm10, %v452_v57, 0.0 }
 0x112   : > { %v1141_v63 = vpack.c.bf16 %v452_v57, %v447_v59  ;;  %v1071_v0 = vpop.f32.mrb[6].mxu0  ;;  %v592_v20 = vsel %vm544_vm9, %v447_v59, 0.0  ;;  %vm555_vm9 = vcmp.lt.s32.totalorder %v539_v39, 371 }
 0x113   : > { %v1579_v3 = vadd.f32 %v1071_v0, %v1530_v31  ;;  %v456_v4 = vpop.f32.mrb[7].mxu0  ;;  %687 = vxpose.xlu0.b32.cont [3/16] (narrow) %v590_v1, 8  ;;  %vm1162_vm10 = vmpackc.low %vm555_vm9, %vm554_vm8 }
 0x114   : > { %v457_v5 = vadd.f32 %v1530_v31, %v456_v4  ;;  %1143 = vmatpush3.bf16.msk.msra.mxu1 %vm1142_vm11, %v1141_v63  ;;  %vm609_vm11 = vcmp.eq.s32.totalorder %v1518_v26, %v987_v27 }
 0x115   : > { %1144 = vmatprep.subr.bf16.mxu1 %v1345_v23  ;;  %v595_v47 = vsel %vm547_vm13, %v1579_v3, 0.0 }
 0x116   : > { %v1145_v9 = vpack.c.bf16 %v1579_v3, %v457_v5  ;;  %v1074_v10 = vpop.f32.mrb[8].mxu0  ;;  %v594_v42 = vsel %vm546_vm12, %v457_v5, 0.0  ;;  %vm683_vm12 = vcmask 15360  }
 0x117   : > { %v472_v13 = vadd.f32 %v1074_v10, %v1530_v31  ;;  %v466_v14 = vpop.f32.mrb[9].mxu0  ;;  %688 = vxpose.xlu0.b32.cont [4/16] (narrow) %v591_v11, 8 }
 0x118   : > { %v467_v15 = vadd.f32 %v1530_v31, %v466_v14  ;;  %1147 = vmatpush3.bf16.msk.msra.mxu1 %vm1146_vm14, %v1145_v9 }
 0x119   : > { %1148 = vmatprep.subr.bf16.mxu1 %v1345_v23 }
 0x11a   : > { %v1149_v18 = vpack.c.bf16 %v472_v13, %v467_v15  ;;  %v1077_v19 = vpop.f32.mrb[10].mxu0 }
 0x11b   : > { %v482_v24 = vadd.f32 %v1077_v19, %v1530_v31  ;;  %v476_v25 = vpop.f32.mrb[11].mxu0  ;;  %689 = vxpose.xlu0.b32.cont [5/16] (narrow) %v592_v20, 8 }
 0x11c   : > { %v477_v28 = vadd.f32 %v1530_v31, %v476_v25  ;;  %1151 = vmatpush3.bf16.msk.msra.mxu1 %vm1150_vm1, %v1149_v18 }
 0x11d   : > { %1152 = vmatprep.subr.bf16.mxu1 %v1345_v23  ;;  %v599_v50 = vsel %vm551_vm3, %v482_v24, 0.0 }
 0x11e   : > { %v1153_v32 = vpack.c.bf16 %v482_v24, %v477_v28  ;;  %v1080_v33 = vpop.f32.mrb[12].mxu0  ;;  %v598_v49 = vsel %vm550_vm2, %v477_v28, 0.0 }
 0x11f   : > { %v492_v36 = vadd.f32 %v1080_v33, %v1530_v31  ;;  %v486_v37 = vpop.f32.mrb[13].mxu0  ;;  %690 = vxpose.xlu0.b32.cont [6/16] (narrow) %v593_v34, 8 }
 0x120   : > { %v487_v38 = vadd.f32 %v1530_v31, %v486_v37  ;;  %1155 = vmatpush3.bf16.msk.msra.mxu1 %vm1154_vm4, %v1153_v32 }
 0x121   : > { %1156 = vmatprep.subr.bf16.mxu1 %v1345_v23  ;;  %v601_v51 = vsel %vm553_vm6, %v492_v36, 0.0 }
 0x122   : > { %v1157_v40 = vpack.c.bf16 %v492_v36, %v487_v38  ;;  %v1083_v41 = vpop.f32.mrb[14].mxu0  ;;  %v600_v26 = vsel %vm552_vm5, %v487_v38, 0.0 }
 0x123   : > { %v502_v43 = vadd.f32 %v1083_v41, %v1530_v31  ;;  %v496_v44 = vpop.f32.mrb[15].mxu0  ;;  %691 = vxpose.xlu0.b32.cont [7/16] (narrow) %v594_v42, 8 }
 0x124   : > { %v497_v45 = vadd.f32 %v1530_v31, %v496_v44  ;;  %1159 = vmatpush3.bf16.msk.msra.mxu1 %vm1158_vm7, %v1157_v40  ;;  %v596_v31 = vsel %vm548_vm15, %v467_v15, 0.0 }
 0x125   : > { %1160 = vmatprep.subr.bf16.mxu1 %v1345_v23  ;;  %v597_v23 = vsel %vm549_vm0, %v472_v13, 0.0  ;;  %v603_v53 = vsel %vm555_vm9, %v502_v43, 0.0 }
 0x126   : > { %v1161_v46 = vpack.c.bf16 %v502_v43, %v497_v45  ;;  %v602_v52 = vsel %vm554_vm8, %v497_v45, 0.0 }
 0x127   : > { %692 = vxpose.xlu0.b32.cont [8/16] (narrow) %v595_v47, 8 }
 0x128   : > { %1163 = vmatpush3.bf16.msk.msra.mxu1 %vm1162_vm10, %v1161_v46 }
 0x12b   : > { %1117 = vmatmul.mubr.msk.f32.vlgmr.msra.gmra.mrb[0].mxu1 %vm609_vm11, %v1348_v48  ;;  %693 = vxpose.xlu0.b32.cont [9/16] (narrow) %v596_v31, 8 }
 0x12f   : > { %694 = vxpose.xlu0.b32.cont [10/16] (narrow) %v597_v23, 8 }
 0x133   : > { %695 = vxpose.xlu0.b32.cont [11/16] (narrow) %v598_v49, 8 }
 0x137   : > { %696 = vxpose.xlu0.b32.cont [12/16] (narrow) %v599_v50, 8 }
 0x13b   : > { %697 = vxpose.xlu0.b32.cont [13/16] (narrow) %v600_v26, 8 }
 0x13f   : > { %698 = vxpose.xlu0.b32.cont [14/16] (narrow) %v601_v51, 8 }
 0x143   : > { %699 = vxpose.xlu0.b32.cont [15/16] (narrow) %v602_v52, 8 }
 0x147   : > { %700 = vxpose.xlu0.b32.end [16/16] (narrow) %v603_v53, 8 }
 0x18b   : > { %v701_v54 = vpop.trf.xlu0 }
 0x18c   : > { %718 = vst [vmem:[%s717_s6] sm:$0x1] %v701_v54 }
 0x1fe   : > { %v678_v56 = vpop.f32.mrb[0].mxu1 }
 0x1ff   : > { %v682_v57 = vadd.f32 %v678_v56, %v611_v55  ;;  %v1118_v58 = vpop.f32.mrb[1].mxu1 }
 0x201   : > { %684 = vst.msk [vmem:[#allocation3] sm:$0xff] %vm683_vm12, %v682_v57 }
 0x202 PF: > { %p1005_p2 = scmp.ne.s32.totalorder %s1330_s19, 1 }
 0x203   : > { %p1006_p3 = scmp.ne.s32.totalorder (!%p1005_p2), %s1326_s18, 0 }
 0x204   : > { %722 = sbr.rel (%p1005_p2) target bundleno = 1235 (0x4d3), region = 48 }
 0x20b   : > { %726 = sbr.rel (%p1006_p3) target bundleno = 1013 (0x3f5), region = 52  ;;  %v727_v59 = vld [vmem:[#allocation3] sm:$0xff] (!%p1006_p3)  ;;  %s1349_s9 = smov (!%p1006_p3), 127   ;;  %vm776_vm14 = vcmask (!%p1006_p3), 57344  }
 0x20c   : > { %730 = vrot.lane.b32.xlu0 (!%p1006_p3), %v727_v59, %s1349_s9  ;;  %s1350_s10 = smov (!%p1006_p3), 1   ;;  %vm728_vm13 = vcmp.gt.f32.partialorder (!%p1006_p3), %v727_v59, 0.5 }
 0x27e   : > { %v731_v60 = vpop.permute.xlu0 %730 }
 0x27f   : > { %1246 = vrcp.f32 %v731_v60 }
 0x289   : > { %v1247_v61 = vpop.eup %1246 }
 0x28a   : > { %v734_v62 = vmul.f32 %v1247_v61, %v727_v59 }
 0x28c   : > { %736 = vrot.lane.b32.xlu0 %v734_v62, %s1350_s10 }
 0x2fe   : > { %v737_v63 = vpop.permute.xlu0 %736 }
 0x2ff   : > { %v739_v0 = vsel %vm728_vm13, %v737_v63, 0.0 }
 0x300   : > { %741 = vrot.lane.b32.xlu1 %v739_v0, %s1349_s9 }
 0x372   : > { %v742_v1 = vpop.permute.xlu1 %741 }
 0x373   : > { %744 = vxpose.xlu1.b32.start.end [1/1] (short) (narrow) %v742_v1, 8 }
 0x3f3   : > { %v760_v2 = vpop.trf.xlu1 }
 0x3f4   : > { %777 = vst.msk [vmem:[#allocation4] sm:$0x1] %vm776_vm14, %v760_v2 }
 0x3f5 PF: > { %v779_v3 = vlaneseq  ;;  %v1351_v4 = vmov 0.0   ;;  %v1007_v5 = vld [vmem:[%s1460_s23] ss:$0 sm:$0xff]  ;;  %vm1352_vm15 = vmmov 0   ;;  %vm788_vm0 = vcmask 64512   ;;  %s862_s11 = scalar_lea.vmem [#allocation2], %s1326_s18 }
 0x3f6   : > { %1119 = vmatprep.subr.mxu0 %v1351_v4  ;;  %1121 = vmatprep.mubr.msk.f32.mxu0 %vm1352_vm15, %v1351_v4  ;;  %v1353_v8 = vmov 1.0   ;;  %v863_v9 = vld [vmem:[%s862_s11] sm:$0x1] }
 0x3f7   : > { %v780_v6 = vshrl.u32 %v779_v3, 7 }
 0x3f9   : > { %vm785_vm1 = vcmp.eq.s32.totalorder %v780_v6, %v1007_v5 }
 0x3fa   : > { %1120 = vmatpush3.msk.msra.mxu0 %vm785_vm1, %v1353_v8 }
 0x3fb   : > { %v787_v7 = vld [vmem:[#allocation4] sm:$0x1] }
 0x3fc   : > { %1122 = vmatmul.mubr.msk.f32.vlgmr.msra.gmra.mrb[0].mxu0 %vm788_vm0, %v787_v7 }
 0x4cf   : > { %v858_v10 = vpop.f32.mrb[0].mxu0 }
 0x4d0   : > { %v864_v11 = vsub.f32 %v863_v9, %v858_v10  ;;  %v1123_v12 = vpop.f32.mrb[1].mxu0 }
 0x4d2   : > { %865 = vst [vmem:[%s1469_s25] sm:$0x1] %v864_v11 }
 0x4d3 PF: > { %s873_s23 = smul.u32 %s1326_s18, %s1330_s19  ;;  %s880_s12 = sshll.u32 %s1469_s25, 4  ;;  %s1663_s12 = int_to_ptr.vmem [resolvable:$true] %s880_s12 }
 0x4d4   : > { %s867_s30 = scalar_lea.sflag [#allocation6], %s246_s8  ;;  %s1248_s26 = scalar_lea.vmem %s1663_s12, 16 }
 0x4d5   : > { %s1010_s13 = sshll.u32 %s873_s23, 4  ;;  %p1249_p4 = scmp.ne.s32.totalorder %s1663_s12, %s1248_s26 }
 0x4d6   : > { %s878_s27 = scalar_lea.hbm %s1718_s4, %s1010_s13  ;;  %s1354_s5 = smov [#allocation5]  }
 0x4d7   : > { %p1250_p5 = pnand %p1249_p4, %p1433_p6  ;;  %s1252_s18 = sshll.u32 %s1354_s5, 4  ;;  %s1253_s18 = int_to_ptr.vmem [resolvable:$false] %s1252_s18 }
 0x4d8   : > { %s1254_s19 = scalar_lea.vmem %s1253_s18, 32  ;;  %p1255_p9 = scmp.lt.s32.totalorder %s1663_s12, %s1253_s18 }
 0x4d9   : > { %p1251_p7 = pneg %p1250_p5  ;;  %p1256_p10 = scmp.lt.s32.totalorder %s1254_s19, %s1248_s26 }
 0x4db   : > { %p1257_p11 = por %p1256_p10, %p1255_p9 }
 0x4dd   : > { %p1258_p12 = pnand %p1257_p11, %p1251_p7 }
 0x4df   : > { %1261 = shalt.err (!%p1258_p12)
}
 0x4e0   : > { %s1262_s25 = scalar_lea.hbm %s878_s27, 16  ;;  %s1266_s9 = scalar_lea.hbm %s1718_s4, 48 }
 0x4e1   : > { %p1263_p13 = scmp.ne.s32.totalorder %s878_s27, %s1262_s25  ;;  %p1267_p2 = scmp.lt.u32.totalorder %s878_s27, %s1718_s4 }
 0x4e2   : > { %p1268_p3 = scmp.lt.u32.totalorder %s1266_s9, %s1262_s25  ;;  %p1270_p5 = scmp.lt.u32.totalorder %s1262_s25, %s878_s27 }
 0x4e3   : > { %p1264_p0 = pnand %p1263_p13, %p1433_p6 }
 0x4e4   : > { %p1269_p4 = por %p1268_p3, %p1267_p2 }
 0x4e5   : > { %p1265_p1 = pneg %p1264_p0 }
 0x4e6   : > { %p1271_p9 = por %p1270_p5, %p1269_p4 }
 0x4e8   : > { %p1272_p7 = pnand %p1271_p9, %p1265_p1 }
 0x4ea   : > { %1275 = shalt.err (!%p1272_p7)
}
 0x4eb   : > { %1164 = dma.vmem_to_hbm [thread:$0]  (%p1433_p6), %s1663_s12, 16, %s878_s27, %s867_s30  }
 0x4ec PF: > { %p1170_p10 = scmp.ge.s32.totalorder %s1342_s22, 2  ;;  %s892_s23 = sand.u32 1, %s1314_s15  }
 0x4ed   : > { %s893_s13 = scalar_lea.sflag [#allocation6], %s892_s23 }
 0x4ee   : > { %p1167_p11 = pnand %p1170_p10, %p1440_p8 }
 0x4f0   : > { %1309 = dma.done.wait (!%p1167_p11), %s893_s13, 16  }
 0x4f1   : > { %1311 = vsyncadd (!%p1167_p11), %s893_s13, 4294967280  ;;  %s17_s22 = sadd.s32 1, %s1342_s22   ;;  %s1725_s28 = sld [smem:[#allocation8_spill]] }
 0x4f2   : > { %p14_p12 = scmp.ge.s32.totalorder %s17_s22, 8   ;;  %s1726_s12 = sld [smem:[#allocation9_spill]] }
 0x4f3   : > { %s1727_s15 = smov %s1318_s16  ;;  %s1728_s16 = smov %s1322_s17 }
 0x4f4   : > { %s1729_s17 = smov %s1449_s7  ;;  %s1730_s18 = smov %s1334_s20 }
 0x4f5   : > { %s1731_s19 = smov %s1338_s21  ;;  %16 = sbr.rel (!%p14_p12) target bundleno = 5 (0x5), region = 92 }
 0x4f7   : > { %s1732_s20 = smov %s1725_s28 }
 0x4f8   : > { %s1733_s21 = smov %s1726_s12 }
 0x4fc   :  { %897 = vsyncpa [#allocation6], 1 }
 0x4fd   :  { %899 = vsyncpa [#allocation6 + $0x1], 1 }

</bundles_post_ra>
